<compile_context>
chip_gen: v7x
topology: tpu7x:2x2x1
jax: 0.10.0
libtpu: 0.0.40
codegen_flags: <defaults>
</compile_context>

<pallas_src>
import functools

import numpy as np
import jax
import jax.numpy as jnp
from jax.experimental import pallas as pl
from jax.experimental.pallas import tpu as pltpu  # noqa: F401  (TPU backend assumed)

# ---- module hyper-parameters (small, consistent with __init__) ----
NUM_NODES = 8
INPUT_DIM = 16
HIDDEN_DIM = 32
HEADS = 4
NEG_SLOPE = 0.2


def gat_adj_kernel(emb_ref, wcat_ref, adj_ref):
    n, h_num = NUM_NODES, HEADS

    # Single fused MXU matmul: [N, IN] @ [IN, 2H] -> [N, 2H]
    #   columns [0, H)   -> per-head source logits  a_src[n, h]
    #   columns [H, 2H)  -> per-head dest   logits  a_dst[n, h]
    a = jnp.dot(emb_ref[...], wcat_ref[...], preferred_element_type=jnp.float32)
    a_src_t = a[:, :h_num].T          # [H, N] source logits as rows (small XLU transpose)
    a_dst = a[:, h_num:]              # [N, H] dest logits as columns

    # Head-packed logit slab (one vreg): e[i, h*n + j] = a_src[j, h] + a_dst[i, h]
    # (dst i on sublanes, (head, src) packed head-major on lanes)
    e = jnp.concatenate(
        [a_dst[:, h:h + 1] + a_src_t[h:h + 1, :] for h in range(h_num)], axis=1)  # [n, H*n]

    # Self-loop mask positions: lane == row + h*n for some head h (no int mod needed).
    row = jax.lax.broadcasted_iota(jnp.int32, (n, h_num * n), 0)    # dst index i
    lane = jax.lax.broadcasted_iota(jnp.int32, (n, h_num * n), 1)   # h*n + j
    diag = lane == row
    for h in range(1, h_num):
        diag = jnp.logical_or(diag, lane == row + h * n)

    # leaky_relu + self-loop mask, applied ONCE on the packed slab (was 4x per-head before).
    e = jnp.where(e > 0, e, NEG_SLOPE * e)
    e = jnp.where(diag, jnp.float32(-1e30), e)

    # Global per-dst-row max over all H*n lanes: exact for the per-head softmax (the same
    # constant is subtracted within each head block).  Guard: only unsafe if one head's
    # logits sit ~87 below the global max (f32 exp underflow); logits here are O(0.3).
    m = jnp.max(e, axis=-1, keepdims=True)
    p = jnp.exp(e - m)   # single EUP exp; exp(-1e30 - m) underflows to exactly 0.0,
    #                      so the previous second diagonal mask is unnecessary.

    # Per-head normalization + head accumulation.  Static lane slices; sums and the division
    # stay on the exact f32 VPU (avoids extra reduced-precision MXU passes and the approx
    # reciprocal that broke the verification tolerance).
    acc = jnp.zeros((n, n), jnp.float32)
    for h in range(h_num):
        ph = p[:, h * n:(h + 1) * n]                         # [n_dst, n_src]
        acc = acc + ph / jnp.sum(ph, axis=-1, keepdims=True)

    # acc[i, j] = sum_h alpha[j->i, h]; module wants adj[src=j, dst=i] = mean_h alpha.
    adj_ref[...] = acc.T * jnp.float32(1.0 / h_num)


def gat_attention_adjacency(emb, w_cat):
    n = emb.shape[0]
    # Everything fits in a couple of vregs -> single gridless invocation, whole-array blocks.
    # TODO(synk): for scaled-up N, tile dst over a grid (lane-dense multiples of 128 on the
    # output), mark it "parallel" (2 TCs on v7x), and re-derive the tile vs 64 MiB VMEM there.
    return pl.pallas_call(
        gat_adj_kernel,
        out_shape=jax.ShapeDtypeStruct((n, n), jnp.float32),
        in_specs=[
            pl.BlockSpec(emb.shape, lambda: (0, 0)),
            pl.BlockSpec(w_cat.shape, lambda: (0, 0)),
        ],
        out_specs=pl.BlockSpec((n, n), lambda: (0, 0)),
    )(emb, w_cat)


def fold_attention_weights(w, att_src, att_dst):
    # Algebraic fold of the GAT linear layer into the attention projectors:
    #   W_src[k, h] = sum_d W[k, h*HID + d] * att_src[h, d]   (likewise for dst)
    # so  emb @ W_src == a_src  directly, without materializing xw = emb @ W.
    # HIGHEST precision keeps the fold effectively exact f32 (avoids bf16-pass drift).
    hp = jax.lax.Precision.HIGHEST
    w3 = w.reshape(INPUT_DIM, HEADS, HIDDEN_DIM)
    w_src = jnp.einsum("khd,hd->kh", w3, att_src, precision=hp)
    w_dst = jnp.einsum("khd,hd->kh", w3, att_dst, precision=hp)
    return jnp.concatenate([w_src, w_dst], axis=1)   # [IN_DIM, 2*HEADS]


@jax.jit
def forward_device(emb, lin_w, att_src, att_dst):
    # One jitted program: fold + pallas_call == a single dispatch per forward call.
    w_cat = fold_attention_weights(lin_w, att_src, att_dst)
    return gat_attention_adjacency(emb, w_cat)


@functools.lru_cache(maxsize=None)
def build_edge_index(n):
    # torch.cartesian_prod(arange(n), arange(n)).T with self loops removed (host-side glue,
    # cached across calls — it is static data, not device compute).
    src = np.repeat(np.arange(n), n)
    dst = np.tile(np.arange(n), n)
    keep = src != dst
    return jnp.asarray(np.stack([src[keep], dst[keep]]), dtype=jnp.int32)


def forward(params):
    edge_index = build_edge_index(NUM_NODES)
    adj = forward_device(params["input_emb"], params["lin_w"],
                         params["att_src"], params["att_dst"])
    return edge_index, adj


def reference_forward(params):
    # Exact float64 numpy reference following the unfolded GATConv math (ground truth that is
    # independent of XLA's default TPU matmul precision).
    emb = np.asarray(params["input_emb"], np.float64)
    w = np.asarray(params["lin_w"], np.float64)
    att_src = np.asarray(params["att_src"], np.float64)
    att_dst = np.asarray(params["att_dst"], np.float64)
    xw = (emb @ w).reshape(NUM_NODES, HEADS, HIDDEN_DIM)
    a_src = np.einsum("nhd,hd->nh", xw, att_src)
    a_dst = np.einsum("nhd,hd->nh", xw, att_dst)
    e = a_src[:, None, :] + a_dst[None, :, :]                 # [src j, dst i, head]
    e = np.where(e > 0, e, NEG_SLOPE * e)
    diag = np.eye(NUM_NODES, dtype=bool)[:, :, None]
    e = np.where(diag, -np.inf, e)
    e = e - e.max(axis=0, keepdims=True)
    p = np.exp(e)
    p = np.where(diag, 0.0, p)
    alpha = p / p.sum(axis=0, keepdims=True)
    return alpha.mean(axis=2)                                  # adj[src, dst]


if __name__ == "__main__":
    key = jax.random.PRNGKey(0)
    k_emb, k_w, k_as, k_ad = jax.random.split(key, 4)
    params = {
        # nn.Parameter(torch.randn(num_nodes, input_dim))
        "input_emb": jax.random.normal(k_emb, (NUM_NODES, INPUT_DIM), jnp.float32),
        # GATConv linear weight (input_dim -> heads*hidden_dim), deterministic synthetic init
        "lin_w": jax.random.normal(k_w, (INPUT_DIM, HEADS * HIDDEN_DIM), jnp.float32) * 0.1,
        # GATConv att_src / att_dst of shape (1, heads, hidden_dim) -> stored as (heads, hidden_dim)
        "att_src": jax.random.normal(k_as, (HEADS, HIDDEN_DIM), jnp.float32) * 0.1,
        "att_dst": jax.random.normal(k_ad, (HEADS, HIDDEN_DIM), jnp.float32) * 0.1,
        # TODO(synk): GATConv bias only affects node_embeddings, which the module discards; omitted.
    }

    edge_index, adj = forward(params)
    adj = jax.block_until_ready(adj)
    edge_index = jax.block_until_ready(edge_index)

    adj_ref = reference_forward(params)
    assert adj.shape == (NUM_NODES, NUM_NODES)
    assert edge_index.shape == (2, NUM_NODES * (NUM_NODES - 1))
    assert float(np.abs(np.asarray(adj)[np.eye(NUM_NODES, dtype=bool)]).max()) == 0.0
    # Tolerance: the normalization is now exact; residual error is the single in-kernel f32
    # MXU matmul, whose pass structure (full f32 vs bf16 passes) is generation/compiler
    # dependent.  Semantic errors would be >1e-2, orders of magnitude above this bound.
    np.testing.assert_allclose(np.asarray(adj), adj_ref, rtol=3e-3, atol=1e-4)
    # each target column's incoming attention sums to 1 (exact division in the kernel)
    np.testing.assert_allclose(np.asarray(adj).sum(axis=0), np.ones(NUM_NODES),
                               rtol=1e-3, atol=1e-4)

    print("KERNEL_OK")
</pallas_src>

<mosaic_0001>
module attributes {stable_mosaic.version = 11 : i64} {
  func.func @gat_adj_kernel(%arg0: memref<8x16xf32, #tpu.memory_space<vmem>>, %arg1: memref<16x8xf32, #tpu.memory_space<vmem>>, %arg2: memref<8x8xf32, #tpu.memory_space<vmem>>) attributes {dimension_semantics = [], scalar_prefetch = 0 : i64, scratch_operands = 0 : i64, tpu.core_type = #tpu.core_type<tc>} {
    %c0 = arith.constant 0 : index
    %c0_0 = arith.constant 0 : index
    %0 = vector.load %arg0[%c0, %c0_0] : memref<8x16xf32, #tpu.memory_space<vmem>>, vector<8x16xf32>
    %c0_1 = arith.constant 0 : index
    %c0_2 = arith.constant 0 : index
    %1 = vector.load %arg1[%c0_1, %c0_2] : memref<16x8xf32, #tpu.memory_space<vmem>>, vector<16x8xf32>
    %cst = arith.constant dense<0.000000e+00> : vector<8x8xf32>
    %2 = tpu.matmul %0, %1, %cst {dimension_numbers = #tpu.dot_dimension_numbers<[1], [0], [0], [1], [0, 0, 1, 1], [], []>} : vector<8x16xf32>, vector<16x8xf32>, vector<8x8xf32> -> vector<8x8xf32>
    %3 = vector.extract_strided_slice %2 {offsets = [0, 0], sizes = [8, 4], strides = [1, 1]} : vector<8x8xf32> to vector<8x4xf32>
    %4 = tpu.transpose %3, [1, 0] : vector<8x4xf32> -> vector<4x8xf32>
    %5 = vector.extract_strided_slice %2 {offsets = [0, 4], sizes = [8, 4], strides = [1, 1]} : vector<8x8xf32> to vector<8x4xf32>
    %6 = vector.extract_strided_slice %5 {offsets = [0, 0], sizes = [8, 1], strides = [1, 1]} : vector<8x4xf32> to vector<8x1xf32>
    %7 = vector.extract_strided_slice %4 {offsets = [0, 0], sizes = [1, 8], strides = [1, 1]} : vector<4x8xf32> to vector<1x8xf32>
    %8 = vector.broadcast %6 : vector<8x1xf32> to vector<8x8xf32>
    %9 = vector.broadcast %7 : vector<1x8xf32> to vector<8x8xf32>
    %10 = arith.addf %8, %9 : vector<8x8xf32>
    %11 = vector.extract_strided_slice %5 {offsets = [0, 1], sizes = [8, 1], strides = [1, 1]} : vector<8x4xf32> to vector<8x1xf32>
    %12 = vector.extract_strided_slice %4 {offsets = [1, 0], sizes = [1, 8], strides = [1, 1]} : vector<4x8xf32> to vector<1x8xf32>
    %13 = vector.broadcast %11 : vector<8x1xf32> to vector<8x8xf32>
    %14 = vector.broadcast %12 : vector<1x8xf32> to vector<8x8xf32>
    %15 = arith.addf %13, %14 : vector<8x8xf32>
    %16 = vector.extract_strided_slice %5 {offsets = [0, 2], sizes = [8, 1], strides = [1, 1]} : vector<8x4xf32> to vector<8x1xf32>
    %17 = vector.extract_strided_slice %4 {offsets = [2, 0], sizes = [1, 8], strides = [1, 1]} : vector<4x8xf32> to vector<1x8xf32>
    %18 = vector.broadcast %16 : vector<8x1xf32> to vector<8x8xf32>
    %19 = vector.broadcast %17 : vector<1x8xf32> to vector<8x8xf32>
    %20 = arith.addf %18, %19 : vector<8x8xf32>
    %21 = vector.extract_strided_slice %5 {offsets = [0, 3], sizes = [8, 1], strides = [1, 1]} : vector<8x4xf32> to vector<8x1xf32>
    %22 = vector.extract_strided_slice %4 {offsets = [3, 0], sizes = [1, 8], strides = [1, 1]} : vector<4x8xf32> to vector<1x8xf32>
    %23 = vector.broadcast %21 : vector<8x1xf32> to vector<8x8xf32>
    %24 = vector.broadcast %22 : vector<1x8xf32> to vector<8x8xf32>
    %25 = arith.addf %23, %24 : vector<8x8xf32>
    %26 = tpu.concatenate %10, %15, %20, %25 in 1 : vector<8x8xf32>, vector<8x8xf32>, vector<8x8xf32>, vector<8x8xf32> -> vector<8x32xf32>
    %27 = tpu.iota {dimensions = array<i32: 0>} : vector<8x32xi32>
    %28 = tpu.iota {dimensions = array<i32: 1>} : vector<8x32xi32>
    %29 = arith.cmpi eq, %28, %27 : vector<8x32xi32>
    %c8_i32 = arith.constant 8 : i32
    %30 = vector.broadcast %c8_i32 : i32 to vector<8x32xi32>
    %31 = arith.addi %27, %30 : vector<8x32xi32>
    %32 = arith.cmpi eq, %28, %31 : vector<8x32xi32>
    %33 = arith.ori %29, %32 : vector<8x32xi1>
    %c16_i32 = arith.constant 16 : i32
    %34 = vector.broadcast %c16_i32 : i32 to vector<8x32xi32>
    %35 = arith.addi %27, %34 : vector<8x32xi32>
    %36 = arith.cmpi eq, %28, %35 : vector<8x32xi32>
    %37 = arith.ori %33, %36 : vector<8x32xi1>
    %c24_i32 = arith.constant 24 : i32
    %38 = vector.broadcast %c24_i32 : i32 to vector<8x32xi32>
    %39 = arith.addi %27, %38 : vector<8x32xi32>
    %40 = arith.cmpi eq, %28, %39 : vector<8x32xi32>
    %41 = arith.ori %37, %40 : vector<8x32xi1>
    %cst_3 = arith.constant 0.000000e+00 : f32
    %42 = vector.broadcast %cst_3 : f32 to vector<8x32xf32>
    %43 = arith.cmpf ogt, %26, %42 : vector<8x32xf32>
    %cst_4 = arith.constant 2.000000e-01 : f32
    %44 = vector.broadcast %cst_4 : f32 to vector<8x32xf32>
    %45 = arith.mulf %44, %26 : vector<8x32xf32>
    %46 = arith.select %43, %26, %45 : vector<8x32xi1>, vector<8x32xf32>
    %cst_5 = arith.constant -1.000000e+30 : f32
    %47 = vector.broadcast %cst_5 : f32 to vector<8x32xf32>
    %48 = arith.select %41, %47, %46 : vector<8x32xi1>, vector<8x32xf32>
    %cst_6 = arith.constant dense<0xFF800000> : vector<8xf32>
    %49 = vector.multi_reduction <maximumf>, %48, %cst_6 [1] : vector<8x32xf32> to vector<8xf32>
    %50 = vector.shape_cast %49 : vector<8xf32> to vector<8x1xf32>
    %51 = vector.broadcast %50 : vector<8x1xf32> to vector<8x32xf32>
    %52 = arith.subf %48, %51 : vector<8x32xf32>
    %53 = math.exp %52 : vector<8x32xf32>
    %cst_7 = arith.constant 0.000000e+00 : f32
    %54 = vector.broadcast %cst_7 : f32 to vector<8x8xf32>
    %55 = vector.extract_strided_slice %53 {offsets = [0, 0], sizes = [8, 8], strides = [1, 1]} : vector<8x32xf32> to vector<8x8xf32>
    %cst_8 = arith.constant dense<0.000000e+00> : vector<8xf32>
    %56 = vector.multi_reduction <add>, %55, %cst_8 [1] : vector<8x8xf32> to vector<8xf32>
    %57 = vector.shape_cast %56 : vector<8xf32> to vector<8x1xf32>
    %58 = vector.broadcast %57 : vector<8x1xf32> to vector<8x8xf32>
    %59 = arith.divf %55, %58 : vector<8x8xf32>
    %60 = arith.addf %54, %59 : vector<8x8xf32>
    %61 = vector.extract_strided_slice %53 {offsets = [0, 8], sizes = [8, 8], strides = [1, 1]} : vector<8x32xf32> to vector<8x8xf32>
    %cst_9 = arith.constant dense<0.000000e+00> : vector<8xf32>
    %62 = vector.multi_reduction <add>, %61, %cst_9 [1] : vector<8x8xf32> to vector<8xf32>
    %63 = vector.shape_cast %62 : vector<8xf32> to vector<8x1xf32>
    %64 = vector.broadcast %63 : vector<8x1xf32> to vector<8x8xf32>
    %65 = arith.divf %61, %64 : vector<8x8xf32>
    %66 = arith.addf %60, %65 : vector<8x8xf32>
    %67 = vector.extract_strided_slice %53 {offsets = [0, 16], sizes = [8, 8], strides = [1, 1]} : vector<8x32xf32> to vector<8x8xf32>
    %cst_10 = arith.constant dense<0.000000e+00> : vector<8xf32>
    %68 = vector.multi_reduction <add>, %67, %cst_10 [1] : vector<8x8xf32> to vector<8xf32>
    %69 = vector.shape_cast %68 : vector<8xf32> to vector<8x1xf32>
    %70 = vector.broadcast %69 : vector<8x1xf32> to vector<8x8xf32>
    %71 = arith.divf %67, %70 : vector<8x8xf32>
    %72 = arith.addf %66, %71 : vector<8x8xf32>
    %73 = vector.extract_strided_slice %53 {offsets = [0, 24], sizes = [8, 8], strides = [1, 1]} : vector<8x32xf32> to vector<8x8xf32>
    %cst_11 = arith.constant dense<0.000000e+00> : vector<8xf32>
    %74 = vector.multi_reduction <add>, %73, %cst_11 [1] : vector<8x8xf32> to vector<8xf32>
    %75 = vector.shape_cast %74 : vector<8xf32> to vector<8x1xf32>
    %76 = vector.broadcast %75 : vector<8x1xf32> to vector<8x8xf32>
    %77 = arith.divf %73, %76 : vector<8x8xf32>
    %78 = arith.addf %72, %77 : vector<8x8xf32>
    %79 = tpu.transpose %78, [1, 0] : vector<8x8xf32> -> vector<8x8xf32>
    %cst_12 = arith.constant 2.500000e-01 : f32
    %80 = vector.broadcast %cst_12 : f32 to vector<8x8xf32>
    %81 = arith.mulf %79, %80 : vector<8x8xf32>
    %c0_13 = arith.constant 0 : index
    %c0_14 = arith.constant 0 : index
    %82 = vector.load %arg2[%c0_13, %c0_14] : memref<8x8xf32, #tpu.memory_space<vmem>>, vector<8x8xf32>
    tpu.vector_store %arg2[%c0_13, %c0_14], %81 {strides = array<i32>} : memref<8x8xf32, #tpu.memory_space<vmem>>, vector<8x8xf32>,
    return
  }
}

</mosaic_0001>

<bundles_post_ra>
// kernel: forward_device.1
= control target key start
LH: loop header
LB: loop body
LE: loop exit
PB: predicated region body
PF: predicated region fallthrough
CT: control target
= control target key end

     0   :  { %v361_v2 = vmov 0.0|0.0   ;;  %vm362_vm0 = vmmov 0   ;;  %v363_v4 = vmov 0.0   ;;  %s419_s0 = inlined_call_operand.vmem [shape: f32[8,16], index: 0, kind: input, shape index: {}]   ;;  %s420_s1 = inlined_call_operand.vmem [shape: f32[16,8], index: 1, kind: input, shape index: {}]   ;;  %s421_s2 = inlined_call_operand.hbm [shape: f32[8,8], index: 2, kind: output, shape index: {}]  }
   0x1   :  { %v13_v0 = vld [vmem:[%s420_s1] sm:$0xff]  ;;  %v14_v1 = vld [vmem:[%s420_s1 + $0x8] sm:$0xff]  ;;  %305 = vmatprep.subr.bf16.mxu0 %v361_v2  ;;  %302 = vmatprep.mubr.msk.f32.mxu0 %vm362_vm0, %v363_v4 }
   0x2   :  { %v306_v3 = vpack.c.bf16 %v14_v1, %v13_v0 }
   0x3   :  { %7 = vsyncpa [#allocation3], 0  ;;  %v364_v5 = vmov 7   ;;  %v365_v6 = vmov 5   ;;  %v12_v7 = vld [vmem:[%s419_s0] sm:$0xff]  ;;  %vm15_vm1 = vcmask 130048   ;;  %v126_v12 = vlaneseq }
   0x4   :  { %324 = vset.pattern.permute.xlu1 %v364_v5  ;;  %322 = vset.pattern.permute.xlu0 %v365_v6  ;;  %v366_v10 = vmov 6   ;;  %v367_v11 = vmov 4   ;;  %s368_s0 = smov 8   ;;  %s369_s1 = smov 16   ;;  %vm170_vm4 = vcmask 64512   ;;  %vm173_vm7 = vcmask 195584  }
   0x5   :  { %307 = vmatpush3.bf16.msra.mxu0 %v306_v3  ;;  %v127_v13 = vshrl.u32 %v126_v12, 7  ;;  %s370_s15 = smov 24   ;;  %v178_v29 = vand.u32 127, %v126_v12  ;;  %vm193_vm12 = vcmask 261120   ;;  %s371_s16 = smov 112  }
   0x6   :  { %s372_s17 = smov 120   ;;  %s373_s18 = smov 104  }
   0x7   :  { %v137_v15 = vsub.s32 1, %v127_v13  ;;  %v146_v16 = vsub.s32 2, %v127_v13  ;;  %v155_v20 = vsub.s32 3, %v127_v13  ;;  %v128_v28 = vsub.s32 0, %v127_v13  ;;  %s374_s19 = smov [#allocation2]  }
   0x8   :  { %303 = vmatmul.mubr.msk.f32.vlgmr.msra.gmra.mrb[0].mxu0 %vm15_vm1, %v12_v7  ;;  %v180_v30 = vadd.s32 8, %v127_v13  ;;  %v183_v32 = vadd.s32 16, %v127_v13  ;;  %vm179_vm2 = vcmp.eq.s32.totalorder %v178_v29, %v127_v13  ;;  %v186_v34 = vadd.s32 24, %v127_v13  ;;  %s286_s20 = sshll.u32 %s374_s19, 4  ;;  %s287_s20 = int_to_ptr.vmem [resolvable:$true] %s286_s20 }
   0x9   :  { %s337_s21 = scalar_lea.vmem %s287_s20, 128  ;;  %p342_p1 = scmp.lt.s32.totalorder %s287_s20, %s287_s20 }
   0xa   :  { %vm181_vm3 = vcmp.eq.s32.totalorder %v178_v29, %v180_v30  ;;  %vm184_vm6 = vcmp.eq.s32.totalorder %v178_v29, %v183_v32  ;;  %vm187_vm9 = vcmp.eq.s32.totalorder %v178_v29, %v186_v34  ;;  %p338_p0 = scmp.ne.s32.totalorder %s287_s20, %s337_s21  ;;  %p343_p2 = scmp.lt.s32.totalorder %s337_s21, %s337_s21 }
   0xb   :  { %vm182_vm5 = vmor %vm179_vm2, %vm181_vm3 }
   0xc   :  { %vm185_vm8 = vmor %vm182_vm5, %vm184_vm6  ;;  %p344_p3 = por %p343_p2, %p342_p1 }
   0xd   :  { %vm188_vm11 = vmor %vm185_vm8, %vm187_vm9 }
   0xe   :  { %p345_p4 = pnand %p344_p3, %p338_p0 }
  0xdb   :  { %v85_v8 = vpop.f32.mrb[0].mxu0 }
  0xdc   :  { %150 = vperm.xlu1 %324, %v85_v8   ;;  %132 = vperm.xlu0 %322, %v85_v8   ;;  %v304_v9 = vpop.f32.mrb[1].mxu0 }
  0xe0   :  { %323 = vset.pattern.permute.xlu0 %v366_v10 }
  0xe1   :  { %141 = vperm.xlu0 %323, %v85_v8  }
  0xe5   :  { %325 = vset.pattern.permute.xlu0 %v367_v11 }
  0xe6   :  { %123 = vperm.xlu0 %325, %v85_v8  }
  0xea   :  { %326 = vset.pattern.permute.xlu0 %v364_v5 }
 0x105   :  { %89 = vxpose.xlu1.b32.start.end [1/1] (short) (narrow) %v85_v8, 8 }
 0x15b   :  { %v151_v14 = vpop.permute.xlu1 %150  ;;  %v133_v17 = vpop.permute.xlu0 %132 }
 0x160   :  { %v142_v23 = vpop.permute.xlu0 %141 }
 0x165   :  { %v124_v27 = vpop.permute.xlu0 %123 }
 0x185   :  { %v105_v18 = vpop.trf.xlu1 }
 0x186   :  { %v138_v19 = vrot.slane %v105_v18, %v137_v15  ;;  %v147_v21 = vrot.slane %v105_v18, %v146_v16  ;;  %v156_v24 = vrot.slane %v105_v18, %v155_v20  ;;  %v129_v33 = vrot.slane %v105_v18, %v128_v28 }
 0x188   :  { %v139_v22 = vadd.f32 %v138_v19, %v133_v17  ;;  %v148_v25 = vadd.f32 %v147_v21, %v142_v23  ;;  %v157_v26 = vadd.f32 %v156_v24, %v151_v14  ;;  %v130_v36 = vadd.f32 %v129_v33, %v124_v27 }
 0x18a   :  { %159 = vrot.lane.b32.xlu0 %v139_v22, %s368_s0 }
 0x18e   :  { %163 = vrot.lane.b32.xlu0 %v148_v25, %s369_s1 }
 0x192   :  { %167 = vrot.lane.b32.xlu0 %v157_v26, %s370_s15 }
 0x1fc   :  { %v160_v31 = vpop.permute.xlu0 %159 }
 0x1fd   :  { %v171_v37 = vsel %vm170_vm4, %v130_v36, %v160_v31 }
 0x200   :  { %v164_v35 = vpop.permute.xlu0 %163 }
 0x201   :  { %v172_v38 = vsel %vm15_vm1, %v171_v37, %v164_v35 }
 0x204   :  { %v168_v39 = vpop.permute.xlu0 %167 }
 0x205   :  { %v174_v40 = vsel %vm173_vm7, %v172_v38, %v168_v39 }
 0x206   :  { %vm189_vm10 = vcmp.gt.f32.partialorder %v174_v40, 0.0  ;;  %v190_v41 = vmul.f32 0.2, %v174_v40 }
 0x208   :  { %v191_v42 = vsel %vm189_vm10, %v174_v40, %v190_v41 }
 0x209   :  { %v192_v43 = vsel %vm188_vm11, -1e+30, %v191_v42 }
 0x20a   :  { %v194_v44 = vsel %vm193_vm12, %v192_v43, -inf }
 0x20b   :  { %195 = vmax.xlane.f32.xlu0 %v194_v44 }
 0x298   :  { %v196_v45 = vpop.xlane.xlu0 %195 }
 0x299   :  { %v197_v46 = vsub.f32 %v192_v43, %v196_v45 }
 0x29b   :  { %v198_v47 = vmul.f32 1.442695, %v197_v46 }
 0x29d   :  { %327 = vpow2.f32 %v198_v47 }
 0x2a7   :  { %v328_v48 = vpop.eup %327 }
 0x2a8   :  { %220 = vrot.lane.b32.xlu0 %v328_v48, %s371_s16  ;;  %207 = vrot.lane.b32.xlu1 %v328_v48, %s372_s17  ;;  %v200_v55 = vsel %vm170_vm4, %v328_v48, 0.0 }
 0x2ac   :  { %233 = vrot.lane.b32.xlu1 %v328_v48, %s373_s18 }
 0x31a   :  { %v221_v49 = vpop.permute.xlu0 %220  ;;  %v208_v50 = vpop.permute.xlu1 %207 }
 0x31b   :  { %v223_v51 = vsel %vm170_vm4, %v221_v49, 0.0  ;;  %v210_v52 = vsel %vm170_vm4, %v208_v50, 0.0 }
 0x31c   :  { %224 = vadd.xlane.f32.xlu0 %v223_v51  ;;  %211 = vadd.xlane.f32.xlu1 %v210_v52 }
 0x31e   :  { %v234_v53 = vpop.permute.xlu1 %233 }
 0x31f   :  { %v236_v54 = vsel %vm170_vm4, %v234_v53, 0.0 }
 0x320   :  { %237 = vadd.xlane.f32.xlu1 %v236_v54  ;;  %201 = vadd.xlane.f32.xlu0 %v200_v55 }
 0x3a9   :  { %v225_v56 = vpop.xlane.xlu0 %224  ;;  %v212_v57 = vpop.xlane.xlu1 %211 }
 0x3aa   :  { %329 = vrcp.f32 %v225_v56 }
 0x3ab   :  { %331 = vrcp.f32 %v212_v57 }
 0x3ad   :  { %v238_v58 = vpop.xlane.xlu1 %237  ;;  %v202_v1 = vpop.xlane.xlu0 %201 }
 0x3ae   :  { %333 = vrcp.f32 %v238_v58 }
 0x3af   :  { %335 = vrcp.f32 %v202_v1 }
 0x3b4   :  { %v330_v59 = vpop.eup %329 }
 0x3b5   :  { %v332_v60 = vpop.eup %331  ;;  %v227_v61 = vmul.f32 %v330_v59, %v328_v48 }
 0x3b6   :  { %v214_v62 = vmul.f32 %v332_v60, %v328_v48 }
 0x3b7   :  { %229 = vrot.lane.b32.xlu0 %v227_v61, %s371_s16 }
 0x3b8   :  { %v334_v63 = vpop.eup %333  ;;  %216 = vrot.lane.b32.xlu1 %v214_v62, %s372_s17 }
 0x3b9   :  { %v240_v0 = vmul.f32 %v334_v63, %v328_v48  ;;  %v336_v2 = vpop.eup %335 }
 0x3ba   :  { %v204_v3 = vmul.f32 %v336_v2, %v328_v48 }
 0x3bc   :  { %242 = vrot.lane.b32.xlu1 %v240_v0, %s373_s18 }
 0x429   :  { %v230_v6 = vpop.permute.xlu0 %229 }
 0x42a   :  { %v217_v4 = vpop.permute.xlu1 %216 }
 0x42b   :  { %v219_v5 = vadd.f32 %v217_v4, %v204_v3 }
 0x42d   :  { %v232_v7 = vadd.f32 %v230_v6, %v219_v5 }
 0x42e   :  { %v243_v8 = vpop.permute.xlu1 %242 }
 0x42f   :  { %v245_v9 = vadd.f32 %v243_v8, %v232_v7 }
 0x431   :  { %246 = vxpose.xlu1.b32.start.end [1/1] (short) (narrow) %v245_v9, 8 }
 0x4b1   :  { %v262_v10 = vpop.trf.xlu1 }
 0x4b2   :  { %v278_v11 = vmul.f32 0.25, %v262_v10 }
 0x4b4   :  { %279 = vst.msk [vmem:[#allocation2] sm:$0xff] %vm170_vm4, %v278_v11 }
 0x4b5   :  { %348 = shalt.err (!%p345_p4)
}
 0x4b6   :  { %s349_s24 = scalar_lea.hbm %s421_s2, 128 }
 0x4b7   :  { %p350_p5 = scmp.ne.s32.totalorder %s421_s2, %s349_s24  ;;  %p353_p6 = scmp.lt.u32.totalorder %s349_s24, %s421_s2 }
 0x4b9   :  { %p355_p7 = pnand %p353_p6, %p350_p5 }
 0x4bb   :  { %358 = shalt.err (!%p355_p7)
}
 0x4bc   :  { %289 = dma.vmem_to_hbm [thread:$0]  %s287_s20, 128, %s421_s2, [#allocation3]  }
 0x4bd   :  { %359 = dma.done.wait [#allocation3], 128  }
 0x4be   :  { %360 = vsyncadd [#allocation3], 4294967168 }
 0x4bf   :  { %293 = vsyncpa [#allocation3], 1 }

</bundles_post_ra>
